<compile_context>
chip_gen: v6e
topology: v6e:2x2x1
jax: 0.10.0
libtpu: 0.0.40
codegen_flags: <defaults>
</compile_context>

<pallas_src>
import jax
import jax.numpy as jnp
from jax.experimental import pallas as pl
from jax.experimental.pallas import tpu as pltpu

BN_EPS = 1e-5
LANE = 128


def _ceil_to(n, m):
    return ((n + m - 1) // m) * m


def _bn_relu(h, gamma, beta):
    """Fused training-mode BatchNorm1d + ReLU.

    Single-pass statistics (sum / sum-of-squares), biased variance (PyTorch train
    default), fused scale/shift form. rsqrt goes to the EUP (free bundle slot).
    """
    inv_n = jnp.float32(1.0 / h.shape[0])
    s = jnp.sum(h, axis=0, keepdims=True)
    ss = jnp.sum(h * h, axis=0, keepdims=True)
    mean = s * inv_n
    var = jnp.maximum(ss * inv_n - mean * mean, 0.0)     # clamp cancellation error
    scale = gamma * jax.lax.rsqrt(var + BN_EPS)
    shift = beta - mean * scale
    return jnp.maximum(h * scale + shift, 0.0)


def simplenet_kernel(x_ref, w1_ref, w2_ref, w3_ref, p_ref, o_ref):
    """p_ref rows: 0=g1, 1=be1, 2=g2, 3=be2, 4=b3 (each zero-padded to 128 lanes)."""
    x = x_ref[...]
    p = p_ref[...]
    out_dim = o_ref.shape[1]

    # layer1: Linear (bias cancelled by BN mean-subtraction) + BN + ReLU
    h1 = jnp.dot(x, w1_ref[...], preferred_element_type=jnp.float32)
    h1 = _bn_relu(h1, p[0:1, :h1.shape[1]], p[1:2, :h1.shape[1]])

    # layer2: Linear (bias cancelled) + BN + ReLU
    h2 = jnp.dot(h1, w2_ref[...], preferred_element_type=jnp.float32)
    h2 = _bn_relu(h2, p[2:3, :h2.shape[1]], p[3:4, :h2.shape[1]])

    # layer3: plain Linear (bias kept), output stored at native (B, out_dim)
    out = jnp.dot(h2, w3_ref[...], preferred_element_type=jnp.float32) + p[4:5, :out_dim]
    o_ref[...] = out.astype(o_ref.dtype)


def prepare_params(params):
    """One-time padding/packing of weights and per-feature vectors.

    Call once and cache the result; the forward pass does no padding.
    All pad values are exactly zero (required for padded-lane correctness).
    """
    in_dim, h1 = params["w1"].shape
    _, h2 = params["w2"].shape
    _, out_dim = params["w3"].shape
    h1_p = _ceil_to(h1, LANE)
    h2_p = _ceil_to(h2, LANE)
    vec_w = max(h1_p, h2_p)

    w1p = jnp.pad(params["w1"], ((0, 0), (0, h1_p - h1)))            # [in, h1_p]
    w2p = jnp.pad(params["w2"], ((0, h1_p - h1), (0, h2_p - h2)))     # [h1_p, h2_p]
    w3p = jnp.pad(params["w3"], ((0, h2_p - h2), (0, 0)))             # [h2_p, out]

    def row(v):
        v = v.reshape(1, -1).astype(jnp.float32)
        return jnp.pad(v, ((0, 0), (0, vec_w - v.shape[-1])))

    vecs = jnp.concatenate(
        [row(params["g1"]), row(params["be1"]),
         row(params["g2"]), row(params["be2"]),
         row(params["b3"]),
         jnp.zeros((3, vec_w), jnp.float32)],                          # pad to 8 sublanes
        axis=0)                                                        # [8, vec_w]

    return {"w1": w1p, "w2": w2p, "w3": w3p, "vecs": vecs}


@jax.jit
def simplenet_forward(x, prep):
    """x: [B, in_dim] f32. prep: output of prepare_params (cached padded params)."""
    B = x.shape[0]
    w1, w2, w3, vecs = prep["w1"], prep["w2"], prep["w3"], prep["vecs"]
    out_dim = w3.shape[1]

    flops = 2 * B * (w1.shape[0] * w1.shape[1]
                     + w2.shape[0] * w2.shape[1]
                     + w3.shape[0] * w3.shape[1])
    bytes_accessed = 4 * (x.size + w1.size + w2.size + w3.size + vecs.size + B * out_dim)
    cost = pl.CostEstimate(flops=flops,
                           transcendentals=w1.shape[1] + w2.shape[1],
                           bytes_accessed=bytes_accessed)

    vmem_spec = pl.BlockSpec(memory_space=pltpu.MemorySpace.VMEM)
    return pl.pallas_call(
        simplenet_kernel,
        out_shape=jax.ShapeDtypeStruct((B, out_dim), jnp.float32),
        in_specs=[vmem_spec] * 5,
        out_specs=vmem_spec,
        cost_estimate=cost,
    )(x, w1, w2, w3, vecs)


def init_params(key, in_dim, n_hidden_1, n_hidden_2, out_dim):
    """nn.Linear default init U(-1/sqrt(fan_in), 1/sqrt(fan_in)); BN gamma=1, beta=0.
    Linear weights stored pre-transposed as [in, out]."""
    def linear(k, fan_in, fan_out):
        kw, kb = jax.random.split(k)
        bound = 1.0 / jnp.sqrt(float(fan_in))
        w = jax.random.uniform(kw, (fan_in, fan_out), jnp.float32, -bound, bound)
        b = jax.random.uniform(kb, (1, fan_out), jnp.float32, -bound, bound)
        return w, b

    k1, k2, k3 = jax.random.split(key, 3)
    w1, b1 = linear(k1, in_dim, n_hidden_1)
    w2, b2 = linear(k2, n_hidden_1, n_hidden_2)
    w3, b3 = linear(k3, n_hidden_2, out_dim)
    return {
        "w1": w1, "b1": b1,
        "g1": jnp.ones((1, n_hidden_1), jnp.float32),
        "be1": jnp.zeros((1, n_hidden_1), jnp.float32),
        "w2": w2, "b2": b2,
        "g2": jnp.ones((1, n_hidden_2), jnp.float32),
        "be2": jnp.zeros((1, n_hidden_2), jnp.float32),
        "w3": w3, "b3": b3,
    }


def simplenet_reference(x, params):
    """Pure-JAX reference matching the PyTorch module (biases included)."""
    def bn_relu(h, g, b):
        mean = jnp.mean(h, axis=0, keepdims=True)
        var = jnp.mean((h - mean) ** 2, axis=0, keepdims=True)
        return jnp.maximum((h - mean) * jax.lax.rsqrt(var + BN_EPS) * g + b, 0.0)

    h = x @ params["w1"] + params["b1"]
    h = bn_relu(h, params["g1"], params["be1"])
    h = h @ params["w2"] + params["b2"]
    h = bn_relu(h, params["g2"], params["be2"])
    return h @ params["w3"] + params["b3"]


if __name__ == "__main__":
    # Small shapes consistent with the module: batch=8, in_dim=32, h1=64, h2=32, out=16
    B, IN_DIM, H1, H2, OUT_DIM = 8, 32, 64, 32, 16

    key = jax.random.PRNGKey(0)
    kx, kp = jax.random.split(key)
    x = jax.random.normal(kx, (B, IN_DIM), jnp.float32)
    params = init_params(kp, IN_DIM, H1, H2, OUT_DIM)

    prep = prepare_params(params)           # one-time padding/packing; reused every call
    prep = jax.block_until_ready(prep)

    out = jax.block_until_ready(simplenet_forward(x, prep))
    assert out.shape == (B, OUT_DIM)

    ref = jax.block_until_ready(simplenet_reference(x, params))
    assert jnp.allclose(out, ref, rtol=5e-3, atol=5e-4), \
        f"max abs err {jnp.max(jnp.abs(out - ref))}"

    print("KERNEL_OK")
</pallas_src>

<mosaic_0001>
module attributes {stable_mosaic.version = 11 : i64} {
  func.func @simplenet_kernel(%arg0: memref<8x32xf32, #tpu.memory_space<vmem>>, %arg1: memref<32x128xf32, #tpu.memory_space<vmem>>, %arg2: memref<128x128xf32, #tpu.memory_space<vmem>>, %arg3: memref<128x16xf32, #tpu.memory_space<vmem>>, %arg4: memref<8x128xf32, #tpu.memory_space<vmem>>, %arg5: memref<8x16xf32, #tpu.memory_space<vmem>>) attributes {dimension_semantics = [], scalar_prefetch = 0 : i64, scratch_operands = 0 : i64, tpu.core_type = #tpu.core_type<tc>} {
    %c0 = arith.constant 0 : index
    %c0_0 = arith.constant 0 : index
    %0 = vector.load %arg0[%c0, %c0_0] : memref<8x32xf32, #tpu.memory_space<vmem>>, vector<8x32xf32>
    %c0_1 = arith.constant 0 : index
    %c0_2 = arith.constant 0 : index
    %1 = vector.load %arg4[%c0_1, %c0_2] : memref<8x128xf32, #tpu.memory_space<vmem>>, vector<8x128xf32>
    %c0_3 = arith.constant 0 : index
    %c0_4 = arith.constant 0 : index
    %2 = vector.load %arg1[%c0_3, %c0_4] : memref<32x128xf32, #tpu.memory_space<vmem>>, vector<32x128xf32>
    %cst = arith.constant dense<0.000000e+00> : vector<8x128xf32>
    %3 = tpu.matmul %0, %2, %cst {dimension_numbers = #tpu.dot_dimension_numbers<[1], [0], [0], [1], [0, 0, 1, 1], [], []>} : vector<8x32xf32>, vector<32x128xf32>, vector<8x128xf32> -> vector<8x128xf32>
    %4 = vector.extract_strided_slice %1 {offsets = [0, 0], sizes = [1, 128], strides = [1, 1]} : vector<8x128xf32> to vector<1x128xf32>
    %5 = vector.extract_strided_slice %1 {offsets = [1, 0], sizes = [1, 128], strides = [1, 1]} : vector<8x128xf32> to vector<1x128xf32>
    %cst_5 = arith.constant dense<0.000000e+00> : vector<128xf32>
    %6 = vector.multi_reduction <add>, %3, %cst_5 [0] : vector<8x128xf32> to vector<128xf32>
    %7 = vector.shape_cast %6 : vector<128xf32> to vector<1x128xf32>
    %8 = arith.mulf %3, %3 : vector<8x128xf32>
    %cst_6 = arith.constant dense<0.000000e+00> : vector<128xf32>
    %9 = vector.multi_reduction <add>, %8, %cst_6 [0] : vector<8x128xf32> to vector<128xf32>
    %10 = vector.shape_cast %9 : vector<128xf32> to vector<1x128xf32>
    %cst_7 = arith.constant 1.250000e-01 : f32
    %11 = vector.broadcast %cst_7 : f32 to vector<1x128xf32>
    %12 = arith.mulf %7, %11 : vector<1x128xf32>
    %cst_8 = arith.constant 1.250000e-01 : f32
    %13 = vector.broadcast %cst_8 : f32 to vector<1x128xf32>
    %14 = arith.mulf %10, %13 : vector<1x128xf32>
    %15 = arith.mulf %12, %12 : vector<1x128xf32>
    %16 = arith.subf %14, %15 : vector<1x128xf32>
    %cst_9 = arith.constant 0.000000e+00 : f32
    %17 = vector.broadcast %cst_9 : f32 to vector<1x128xf32>
    %18 = arith.maximumf %16, %17 : vector<1x128xf32>
    %cst_10 = arith.constant 9.99999974E-6 : f32
    %19 = vector.broadcast %cst_10 : f32 to vector<1x128xf32>
    %20 = arith.addf %18, %19 : vector<1x128xf32>
    %21 = math.rsqrt %20 : vector<1x128xf32>
    %22 = arith.mulf %4, %21 : vector<1x128xf32>
    %23 = arith.mulf %12, %22 : vector<1x128xf32>
    %24 = arith.subf %5, %23 : vector<1x128xf32>
    %25 = vector.broadcast %22 : vector<1x128xf32> to vector<8x128xf32>
    %26 = arith.mulf %3, %25 : vector<8x128xf32>
    %27 = vector.broadcast %24 : vector<1x128xf32> to vector<8x128xf32>
    %28 = arith.addf %26, %27 : vector<8x128xf32>
    %cst_11 = arith.constant 0.000000e+00 : f32
    %29 = vector.broadcast %cst_11 : f32 to vector<8x128xf32>
    %30 = arith.maximumf %28, %29 : vector<8x128xf32>
    %c0_12 = arith.constant 0 : index
    %c0_13 = arith.constant 0 : index
    %31 = vector.load %arg2[%c0_12, %c0_13] : memref<128x128xf32, #tpu.memory_space<vmem>>, vector<128x128xf32>
    %cst_14 = arith.constant dense<0.000000e+00> : vector<8x128xf32>
    %32 = tpu.matmul %30, %31, %cst_14 {dimension_numbers = #tpu.dot_dimension_numbers<[1], [0], [0], [1], [0, 0, 1, 1], [], []>} : vector<8x128xf32>, vector<128x128xf32>, vector<8x128xf32> -> vector<8x128xf32>
    %33 = vector.extract_strided_slice %1 {offsets = [2, 0], sizes = [1, 128], strides = [1, 1]} : vector<8x128xf32> to vector<1x128xf32>
    %34 = vector.extract_strided_slice %1 {offsets = [3, 0], sizes = [1, 128], strides = [1, 1]} : vector<8x128xf32> to vector<1x128xf32>
    %cst_15 = arith.constant dense<0.000000e+00> : vector<128xf32>
    %35 = vector.multi_reduction <add>, %32, %cst_15 [0] : vector<8x128xf32> to vector<128xf32>
    %36 = vector.shape_cast %35 : vector<128xf32> to vector<1x128xf32>
    %37 = arith.mulf %32, %32 : vector<8x128xf32>
    %cst_16 = arith.constant dense<0.000000e+00> : vector<128xf32>
    %38 = vector.multi_reduction <add>, %37, %cst_16 [0] : vector<8x128xf32> to vector<128xf32>
    %39 = vector.shape_cast %38 : vector<128xf32> to vector<1x128xf32>
    %cst_17 = arith.constant 1.250000e-01 : f32
    %40 = vector.broadcast %cst_17 : f32 to vector<1x128xf32>
    %41 = arith.mulf %36, %40 : vector<1x128xf32>
    %cst_18 = arith.constant 1.250000e-01 : f32
    %42 = vector.broadcast %cst_18 : f32 to vector<1x128xf32>
    %43 = arith.mulf %39, %42 : vector<1x128xf32>
    %44 = arith.mulf %41, %41 : vector<1x128xf32>
    %45 = arith.subf %43, %44 : vector<1x128xf32>
    %cst_19 = arith.constant 0.000000e+00 : f32
    %46 = vector.broadcast %cst_19 : f32 to vector<1x128xf32>
    %47 = arith.maximumf %45, %46 : vector<1x128xf32>
    %cst_20 = arith.constant 9.99999974E-6 : f32
    %48 = vector.broadcast %cst_20 : f32 to vector<1x128xf32>
    %49 = arith.addf %47, %48 : vector<1x128xf32>
    %50 = math.rsqrt %49 : vector<1x128xf32>
    %51 = arith.mulf %33, %50 : vector<1x128xf32>
    %52 = arith.mulf %41, %51 : vector<1x128xf32>
    %53 = arith.subf %34, %52 : vector<1x128xf32>
    %54 = vector.broadcast %51 : vector<1x128xf32> to vector<8x128xf32>
    %55 = arith.mulf %32, %54 : vector<8x128xf32>
    %56 = vector.broadcast %53 : vector<1x128xf32> to vector<8x128xf32>
    %57 = arith.addf %55, %56 : vector<8x128xf32>
    %cst_21 = arith.constant 0.000000e+00 : f32
    %58 = vector.broadcast %cst_21 : f32 to vector<8x128xf32>
    %59 = arith.maximumf %57, %58 : vector<8x128xf32>
    %c0_22 = arith.constant 0 : index
    %c0_23 = arith.constant 0 : index
    %60 = vector.load %arg3[%c0_22, %c0_23] : memref<128x16xf32, #tpu.memory_space<vmem>>, vector<128x16xf32>
    %cst_24 = arith.constant dense<0.000000e+00> : vector<8x16xf32>
    %61 = tpu.matmul %59, %60, %cst_24 {dimension_numbers = #tpu.dot_dimension_numbers<[1], [0], [0], [1], [0, 0, 1, 1], [], []>} : vector<8x128xf32>, vector<128x16xf32>, vector<8x16xf32> -> vector<8x16xf32>
    %62 = vector.extract_strided_slice %1 {offsets = [4, 0], sizes = [1, 16], strides = [1, 1]} : vector<8x128xf32> to vector<1x16xf32>
    %63 = vector.broadcast %62 : vector<1x16xf32> to vector<8x16xf32>
    %64 = arith.addf %61, %63 : vector<8x16xf32>
    %c0_25 = arith.constant 0 : index
    %c0_26 = arith.constant 0 : index
    %65 = vector.load %arg5[%c0_25, %c0_26] : memref<8x16xf32, #tpu.memory_space<vmem>>, vector<8x16xf32>
    tpu.vector_store %arg5[%c0_25, %c0_26], %64 {strides = array<i32>} : memref<8x16xf32, #tpu.memory_space<vmem>>, vector<8x16xf32>,
    return
  }
}

</mosaic_0001>

<bundles_post_ra>
// kernel: simplenet_forward.1
= control target key start
LH: loop header
LB: loop body
LE: loop exit
PB: predicated region body
PF: predicated region fallthrough
CT: control target
= control target key end

     0   :  { %10 = vsyncpa [#allocation3], 0  ;;  %s757_s0 = inlined_call_operand.vmem [shape: f32[8,32], index: 0, kind: input, shape index: {}]   ;;  %s758_s1 = inlined_call_operand.hbm [shape: f32[32,128], index: 1, kind: input, shape index: {}]   ;;  %s759_s2 = inlined_call_operand.vmem [shape: f32[128,128], index: 2, kind: input, shape index: {}]   ;;  %s760_s3 = inlined_call_operand.vmem [shape: f32[128,16], index: 3, kind: input, shape index: {}]   ;;  %s761_s4 = inlined_call_operand.vmem [shape: f32[8,128], index: 4, kind: input, shape index: {}]   ;;  %s762_s5 = inlined_call_operand.hbm [shape: f32[8,16], index: 5, kind: output, shape index: {}]  }
   0x1   :  { %11 = vsyncpa [#allocation4], 0  ;;  %s557_s18 = smov [#allocation2]  }
   0x2   :  { %s19_s19 = sshll.u32 %s557_s18, 4  ;;  %s20_s19 = int_to_ptr.vmem [resolvable:$true] %s19_s19 }
   0x3   :  { %s521_s20 = scalar_lea.vmem %s20_s19, 512  ;;  %p526_p1 = scmp.lt.s32.totalorder %s20_s19, %s20_s19 }
   0x4   :  { %p522_p0 = scmp.ne.s32.totalorder %s20_s19, %s521_s20  ;;  %p527_p2 = scmp.lt.s32.totalorder %s521_s20, %s521_s20 }
   0x6   :  { %p528_p3 = por %p527_p2, %p526_p1 }
   0x8   :  { %p529_p4 = pnand %p528_p3, %p522_p0 }
   0xa   :  { %532 = shalt.err (!%p529_p4)
}
   0xb   :  { %s558_s21 = smov 128   ;;  %s559_s22 = smov 8  }
   0xc   :  { %25 = dma.hbm_to_vmem [thread:$0]  %s758_s1, 512, %s20_s19, [#allocation3], %s558_s21, %s558_s21, %s559_s22  }
   0xd   :  { %553 = dma.done.wait [#allocation3], 512  }
   0xe   :  { %554 = vsyncadd [#allocation3], 4294966784  ;;  %v560_v0 = vmov 0.0   ;;  %vm561_vm0 = vmmov 0   ;;  %v40_v1 = vld [vmem:[#allocation2 + $0x18] sm:$0xff]  ;;  %v39_v2 = vld [vmem:[#allocation2 + $0x10] sm:$0xff]  ;;  %v141_v43 = vlaneseq }
   0xf   :  { %422 = vmatprep.subr.mxu0 %v560_v0  ;;  %430 = vmatprep.mubr.msk.f32.mxu0 %vm561_vm0, %v560_v0  ;;  %v38_v3 = vld [vmem:[#allocation2 + $0x8] sm:$0xff]  ;;  %v37_v4 = vld [vmem:[#allocation2] sm:$0xff]  ;;  %vm41_vm1 = vcmask 261120   ;;  %v167_v6 = vld [vmem:[%s759_s2 + $0x78] sm:$0xff]  ;;  %vm365_vm2 = vcmask 130048  }
  0x10   :  { %433 = vmatprep.subr.mxu1 %v560_v0  ;;  %465 = vmatprep.mubr.msk.f32.mxu1 %vm561_vm0, %v560_v0  ;;  %v35_v5 = vld [vmem:[%s757_s0] sm:$0xff]  ;;  %v166_v7 = vld [vmem:[%s759_s2 + $0x70] sm:$0xff]  ;;  %v165_v8 = vld [vmem:[%s759_s2 + $0x68] sm:$0xff]  ;;  %v674_v44 = vshrl.u32 %v141_v43, 7 }
  0x11   :  { %423 = vmatpush3.msra.mxu0 %v40_v1  ;;  %434 = vmatpush3.msra.mxu1 %v167_v6  ;;  %v164_v9 = vld [vmem:[%s759_s2 + $0x60] sm:$0xff]  ;;  %v163_v10 = vld [vmem:[%s759_s2 + $0x58] sm:$0xff]  ;;  %v162_v11 = vld [vmem:[%s759_s2 + $0x50] sm:$0xff] }
  0x12   :  { %424 = vmatprep.subr.mxu0 %v560_v0  ;;  %435 = vmatprep.subr.mxu1 %v560_v0  ;;  %v161_v12 = vld [vmem:[%s759_s2 + $0x48] sm:$0xff]  ;;  %v160_v13 = vld [vmem:[%s759_s2 + $0x40] sm:$0xff]  ;;  %v159_v14 = vld [vmem:[%s759_s2 + $0x38] sm:$0xff]  ;;  %v143_v48 = vsub.s32 0, %v674_v44  ;;  %v148_v52 = vsub.s32 1, %v674_v44  ;;  %v293_v43 = vsub.s32 4, %v674_v44 }
  0x13   :  { %425 = vmatpush3.msra.mxu0 %v39_v2  ;;  %436 = vmatpush3.msra.mxu1 %v166_v7  ;;  %v158_v15 = vld [vmem:[%s759_s2 + $0x30] sm:$0xff]  ;;  %v157_v16 = vld [vmem:[%s759_s2 + $0x28] sm:$0xff]  ;;  %v156_v17 = vld [vmem:[%s759_s2 + $0x20] sm:$0xff] }
  0x14   :  { %426 = vmatprep.subr.mxu0 %v560_v0  ;;  %437 = vmatprep.subr.mxu1 %v560_v0  ;;  %v155_v18 = vld [vmem:[%s759_s2 + $0x18] sm:$0xff]  ;;  %v154_v19 = vld [vmem:[%s759_s2 + $0x10] sm:$0xff]  ;;  %v153_v20 = vld [vmem:[%s759_s2 + $0x8] sm:$0xff] }
  0x15   :  { %427 = vmatpush3.msra.mxu0 %v38_v3  ;;  %438 = vmatpush3.msra.mxu1 %v165_v8  ;;  %v152_v21 = vld [vmem:[%s759_s2] sm:$0xff]  ;;  %v290_v58 = vld [vmem:[%s760_s3 + $0x78] sm:$0xff]  ;;  %v289_v59 = vld [vmem:[%s760_s3 + $0x70] sm:$0xff] }
  0x16   :  { %428 = vmatprep.subr.mxu0 %v560_v0  ;;  %439 = vmatprep.subr.mxu1 %v560_v0  ;;  %v679_v45 = vld [vmem:[%s761_s4] sm:$0xff]  ;;  %v288_v60 = vld [vmem:[%s760_s3 + $0x68] sm:$0xff]  ;;  %v286_v62 = vld [vmem:[%s760_s3 + $0x58] sm:$0xff] }
  0x17   :  { %429 = vmatpush3.msra.mxu0 %v37_v4  ;;  %440 = vmatpush3.msra.mxu1 %v164_v9  ;;  %v287_v61 = vld [vmem:[%s760_s3 + $0x60] sm:$0xff]  ;;  %v285_v63 = vld [vmem:[%s760_s3 + $0x50] sm:$0xff]  ;;  %v284_v1 = vld [vmem:[%s760_s3 + $0x48] sm:$0xff] }
  0x18   :  { %431 = vmatmul.mubr.msk.f32.vlgmr.msra.gmra.mxu0 %vm41_vm1, %v35_v5  ;;  %468 = vmatprep.subr.mxu0 %v560_v0  ;;  %v283_v2 = vld [vmem:[%s760_s3 + $0x40] sm:$0xff]  ;;  %v282_v3 = vld [vmem:[%s760_s3 + $0x38] sm:$0xff]  ;;  %v281_v4 = vld [vmem:[%s760_s3 + $0x30] sm:$0xff] }
  0x19   :  { %500 = vmatprep.mubr.msk.f32.mxu0 %vm561_vm0, %v560_v0  ;;  %441 = vmatprep.subr.mxu1 %v560_v0  ;;  %v280_v5 = vld [vmem:[%s760_s3 + $0x28] sm:$0xff]  ;;  %v279_v6 = vld [vmem:[%s760_s3 + $0x20] sm:$0xff]  ;;  %v278_v7 = vld [vmem:[%s760_s3 + $0x18] sm:$0xff] }
  0x1a   :  { %442 = vmatpush3.msra.mxu1 %v163_v10  ;;  %469 = vmatpush3.msra.mxu0 %v290_v58  ;;  %v277_v8 = vld [vmem:[%s760_s3 + $0x10] sm:$0xff]  ;;  %v276_v9 = vld [vmem:[%s760_s3 + $0x8] sm:$0xff]  ;;  %v275_v10 = vld [vmem:[%s760_s3] sm:$0xff]  ;;  %s562_s3 = smov [#allocation5]  }
  0x1b   :  { %443 = vmatprep.subr.mxu1 %v560_v0  ;;  %470 = vmatprep.subr.mxu0 %v560_v0  ;;  %s373_s8 = sshll.u32 %s562_s3, 4  ;;  %s374_s8 = int_to_ptr.vmem [resolvable:$true] %s373_s8 }
  0x1c   :  { %444 = vmatpush3.msra.mxu1 %v162_v11  ;;  %471 = vmatpush3.msra.mxu0 %v289_v59  ;;  %s533_s9 = scalar_lea.vmem %s374_s8, 128  ;;  %p538_p6 = scmp.lt.s32.totalorder %s374_s8, %s374_s8 }
  0x1d   :  { %445 = vmatprep.subr.mxu1 %v560_v0  ;;  %472 = vmatprep.subr.mxu0 %v560_v0  ;;  %p534_p5 = scmp.ne.s32.totalorder %s374_s8, %s533_s9  ;;  %p539_p7 = scmp.lt.s32.totalorder %s533_s9, %s533_s9 }
  0x1e   :  { %446 = vmatpush3.msra.mxu1 %v161_v12  ;;  %473 = vmatpush3.msra.mxu0 %v288_v60 }
  0x1f   :  { %447 = vmatprep.subr.mxu1 %v560_v0  ;;  %474 = vmatprep.subr.mxu0 %v560_v0  ;;  %p540_p8 = por %p539_p7, %p538_p6 }
  0x20   :  { %448 = vmatpush3.msra.mxu1 %v160_v13  ;;  %475 = vmatpush3.msra.mxu0 %v287_v61 }
  0x21   :  { %449 = vmatprep.subr.mxu1 %v560_v0  ;;  %476 = vmatprep.subr.mxu0 %v560_v0  ;;  %p541_p9 = pnand %p540_p8, %p534_p5 }
  0x22   :  { %450 = vmatpush3.msra.mxu1 %v159_v14  ;;  %477 = vmatpush3.msra.mxu0 %v286_v62 }
  0x23   :  { %451 = vmatprep.subr.mxu1 %v560_v0  ;;  %478 = vmatprep.subr.mxu0 %v560_v0 }
  0x24   :  { %452 = vmatpush3.msra.mxu1 %v158_v15  ;;  %479 = vmatpush3.msra.mxu0 %v285_v63 }
  0x25   :  { %453 = vmatprep.subr.mxu1 %v560_v0  ;;  %480 = vmatprep.subr.mxu0 %v560_v0 }
  0x26   :  { %454 = vmatpush3.msra.mxu1 %v157_v16  ;;  %481 = vmatpush3.msra.mxu0 %v284_v1 }
  0x27   :  { %455 = vmatprep.subr.mxu1 %v560_v0  ;;  %482 = vmatprep.subr.mxu0 %v560_v0 }
  0x28   :  { %456 = vmatpush3.msra.mxu1 %v156_v17  ;;  %483 = vmatpush3.msra.mxu0 %v283_v2 }
  0x29   :  { %457 = vmatprep.subr.mxu1 %v560_v0  ;;  %484 = vmatprep.subr.mxu0 %v560_v0 }
  0x2a   :  { %458 = vmatpush3.msra.mxu1 %v155_v18  ;;  %485 = vmatpush3.msra.mxu0 %v282_v3 }
  0x2b   :  { %459 = vmatprep.subr.mxu1 %v560_v0  ;;  %486 = vmatprep.subr.mxu0 %v560_v0 }
  0x2c   :  { %460 = vmatpush3.msra.mxu1 %v154_v19  ;;  %487 = vmatpush3.msra.mxu0 %v281_v4 }
  0x2d   :  { %461 = vmatprep.subr.mxu1 %v560_v0  ;;  %488 = vmatprep.subr.mxu0 %v560_v0 }
  0x2e   :  { %462 = vmatpush3.msra.mxu1 %v153_v20  ;;  %489 = vmatpush3.msra.mxu0 %v280_v5 }
  0x2f   :  { %463 = vmatprep.subr.mxu1 %v560_v0  ;;  %490 = vmatprep.subr.mxu0 %v560_v0 }
  0x30   :  { %464 = vmatpush3.msra.mxu1 %v152_v21  ;;  %491 = vmatpush3.msra.mxu0 %v279_v6 }
  0x31   :  { %492 = vmatprep.subr.mxu0 %v560_v0 }
  0x32   :  { %493 = vmatpush3.msra.mxu0 %v278_v7 }
  0x33   :  { %494 = vmatprep.subr.mxu0 %v560_v0 }
  0x34   :  { %495 = vmatpush3.msra.mxu0 %v277_v8 }
  0x35   :  { %496 = vmatprep.subr.mxu0 %v560_v0 }
  0x36   :  { %497 = vmatpush3.msra.mxu0 %v276_v9 }
  0x37   :  { %498 = vmatprep.subr.mxu0 %v560_v0 }
  0x38   :  { %499 = vmatpush3.msra.mxu0 %v275_v10 }
  0xd8   :  { %v111_v22 = vpop.f32.mrf.mxu0 }
  0xd9   :  { %v115_v23 = vrot.slane %v111_v22, 4  ;;  %v121_v24 = vmul.f32 %v111_v22, %v111_v22 }
  0xda   :  { %v432_v25 = vpop.f32.mrf.mxu0 }
  0xdb   :  { %v116_v26 = vadd.f32 %v115_v23, %v111_v22  ;;  %v122_v27 = vrot.slane %v121_v24, 4 }
  0xdd   :  { %v117_v28 = vrot.slane %v116_v26, 2  ;;  %v123_v29 = vadd.f32 %v122_v27, %v121_v24 }
  0xdf   :  { %v118_v30 = vadd.f32 %v117_v28, %v116_v26  ;;  %v124_v31 = vrot.slane %v123_v29, 2 }
  0xe1   :  { %v119_v32 = vrot.slane %v118_v30, 1  ;;  %v125_v33 = vadd.f32 %v124_v31, %v123_v29 }
  0xe3   :  { %v120_v34 = vadd.f32 %v119_v32, %v118_v30  ;;  %v126_v35 = vrot.slane %v125_v33, 1 }
  0xe5   :  { %v127_v36 = vadd.f32 %v126_v35, %v125_v33  ;;  %v128_v37 = vmul.f32 0.125, %v120_v34  ;;  %v266_v33 = vsub.s32 2, %v674_v44 }
  0xe7   :  { %v129_v38 = vmul.f32 0.125, %v127_v36  ;;  %v130_v39 = vmul.f32 %v128_v37, %v128_v37 }
  0xe9   :  { %v131_v40 = vsub.f32 %v129_v38, %v130_v39 }
  0xeb   :  { %v132_v41 = vmax.f32 %v131_v40, 0.0 }
  0xed   :  { %v133_v42 = vadd.f32 1e-05, %v132_v41 }
  0xef   :  { %509 = vrsqrt.f32 %v133_v42 }
  0xfc   :  { %v510_v46 = vpop.eup %509 }
  0xfd   :  { %v135_v47 = vmul.f32 %v510_v46, %v679_v45  ;;  %v294_v46 = vrot.slane %v679_v45, %v293_v43 }
  0xff   :  { %v136_v49 = vmul.f32 %v135_v47, %v128_v37  ;;  %v144_v50 = vrot.slane %v135_v47, %v143_v48  ;;  %v271_v37 = vsub.s32 3, %v674_v44 }
 0x101   :  { %v138_v51 = vrot.slane %v136_v49, 7  ;;  %v145_v54 = vmul.f32 %v144_v50, %v111_v22 }
 0x103   :  { %v140_v53 = vsub.f32 %v679_v45, %v138_v51 }
 0x105   :  { %v149_v55 = vrot.slane %v140_v53, %v148_v52 }
 0x107   :  { %v150_v56 = vadd.f32 %v149_v55, %v145_v54 }
 0x109   :  { %v151_v57 = vmax.f32 %v150_v56, 0.0 }
 0x10b   :  { %466 = vmatmul.mubr.f32.vlgmr.msra.gmra.mxu1 %v151_v57 }
 0x1cb   :  { %v234_v11 = vpop.f32.mrf.mxu1 }
 0x1cc   :  { %v238_v12 = vrot.slane %v234_v11, 4  ;;  %v244_v13 = vmul.f32 %v234_v11, %v234_v11 }
 0x1cd   :  { %v467_v14 = vpop.f32.mrf.mxu1 }
 0x1ce   :  { %v239_v15 = vadd.f32 %v238_v12, %v234_v11  ;;  %v245_v16 = vrot.slane %v244_v13, 4 }
 0x1d0   :  { %v240_v17 = vrot.slane %v239_v15, 2  ;;  %v246_v18 = vadd.f32 %v245_v16, %v244_v13 }
 0x1d2   :  { %v241_v19 = vadd.f32 %v240_v17, %v239_v15  ;;  %v247_v20 = vrot.slane %v246_v18, 2 }
 0x1d4   :  { %v242_v21 = vrot.slane %v241_v19, 1  ;;  %v248_v22 = vadd.f32 %v247_v20, %v246_v18 }
 0x1d6   :  { %v243_v23 = vadd.f32 %v242_v21, %v241_v19  ;;  %v249_v24 = vrot.slane %v248_v22, 1 }
 0x1d8   :  { %v250_v25 = vadd.f32 %v249_v24, %v248_v22  ;;  %v251_v26 = vmul.f32 0.125, %v243_v23 }
 0x1da   :  { %v252_v27 = vmul.f32 0.125, %v250_v25  ;;  %v253_v28 = vmul.f32 %v251_v26, %v251_v26 }
 0x1dc   :  { %v254_v0 = vsub.f32 %v252_v27, %v253_v28 }
 0x1de   :  { %v255_v29 = vmax.f32 %v254_v0, 0.0 }
 0x1e0   :  { %v256_v30 = vadd.f32 1e-05, %v255_v29 }
 0x1e2   :  { %511 = vrsqrt.f32 %v256_v30 }
 0x1ef   :  { %v512_v31 = vpop.eup %511 }
 0x1f0   :  { %v258_v32 = vmul.f32 %v512_v31, %v679_v45 }
 0x1f2   :  { %v259_v34 = vmul.f32 %v258_v32, %v251_v26  ;;  %v267_v36 = vrot.slane %v258_v32, %v266_v33 }
 0x1f4   :  { %v261_v35 = vrot.slane %v259_v34, 7  ;;  %v268_v39 = vmul.f32 %v267_v36, %v234_v11 }
 0x1f6   :  { %v263_v38 = vsub.f32 %v679_v45, %v261_v35 }
 0x1f8   :  { %v272_v40 = vrot.slane %v263_v38, %v271_v37 }
 0x1fa   :  { %v273_v41 = vadd.f32 %v272_v40, %v268_v39 }
 0x1fc   :  { %v274_v42 = vmax.f32 %v273_v41, 0.0 }
 0x1fe   :  { %501 = vmatmul.mubr.f32.vlgmr.msra.gmra.mxu0 %v274_v42 }
 0x2be   :  { %v361_v47 = vpop.f32.mrf.mxu0 }
 0x2bf   :  { %v362_v48 = vadd.f32 %v361_v47, %v294_v46 }
 0x2c0   :  { %v502_v49 = vpop.f32.mrf.mxu0 }
 0x2c1   :  { %366 = vst.msk [vmem:[#allocation5] sm:$0xff] %vm365_vm2, %v362_v48 }
 0x2c2   :  { %544 = shalt.err (!%p541_p9)
}
 0x2c3   :  { %376 = dma.vmem_to_hbm [thread:$0]  %s374_s8, 128, %s762_s5, [#allocation4]  }
 0x2c4   :  { %555 = dma.done.wait [#allocation4], 128  }
 0x2c5   :  { %556 = vsyncadd [#allocation4], 4294967168 }
 0x2c6   :  { %380 = vsyncpa [#allocation3], 1 }
 0x2c7   :  { %381 = vsyncpa [#allocation4], 1 }

</bundles_post_ra>
